<compile_context>
chip_gen: v7x
topology: tpu7x:2x2x1
jax: 0.10.0
libtpu: 0.0.40
codegen_flags: <defaults>
</compile_context>

<pallas_src>
import functools

import jax
import jax.numpy as jnp
from jax.experimental import pallas as pl
from jax.experimental.pallas import tpu as pltpu


def _round_up(x: int, m: int) -> int:
    return ((x + m - 1) // m) * m


def _fused_mlp_kernel(*refs, num_layers: int, relu_flags):
    """refs = (x_ref, w0, b0, w1, b1, ..., o_ref).

    All layers computed back-to-back in VMEM.  bf16 operands into the MXU,
    f32 accumulation and f32 bias/ReLU epilogue, bf16 inter-layer activations,
    single cast at the final store.
    """
    x_ref = refs[0]
    o_ref = refs[-1]
    wb = refs[1:-1]

    h = x_ref[...].astype(jnp.bfloat16)            # bf16 operand for the MXU
    for i in range(num_layers):
        w = wb[2 * i][...]                         # bf16 [in_p, out_p]
        b = wb[2 * i + 1][...]                     # f32  [1,  out_p] -> broadcast
        acc = jnp.dot(h, w, preferred_element_type=jnp.float32) + b
        if relu_flags[i]:
            acc = jnp.maximum(acc, 0.0)
        if i + 1 < num_layers:
            h = acc.astype(jnp.bfloat16)           # narrow before the next dot
        else:
            o_ref[...] = acc.astype(o_ref.dtype)


def mlp_forward_pallas(x, weights, biases, relu_flags, out_dim):
    """Fused MLP forward: one pallas_call, grid over batch tiles."""
    batch, in_dim = x.shape
    assert in_dim == weights[0].shape[0]
    out_pad = weights[-1].shape[1]
    max_width = max(w.shape[1] for w in weights)
    x_bytes = x.dtype.itemsize
    out_bytes = x_bytes

    weight_bytes = sum(int(w.size) * w.dtype.itemsize for w in weights)
    bias_bytes = sum(int(b.size) * b.dtype.itemsize for b in biases)

    # --- Batch tile sized from a VMEM budget -------------------------------
    # Per-row activation working set: double-buffered x tile + double-buffered
    # out tile + intermediate h (f32 acc + bf16 copy, ~2x producer/consumer
    # liveness across the layer loop).
    row_bytes = (2 * in_dim * x_bytes) + (2 * out_pad * out_bytes) \
        + 2 * max_width * (4 + 2)
    act_budget = 40 << 20                      # leave room for weights + scratch
    tb_cap = max(128, min(4096, (act_budget // row_bytes) // 8 * 8))

    batch8 = _round_up(batch, 8)
    if batch8 <= tb_cap:
        if batch8 >= 256:
            # Split into >=2 tiles so the "parallel" batch axis can feed both
            # TensorCores on v7x; extra per-step overhead is negligible.
            tb = _round_up(pl.cdiv(batch8, 2), 8)
        else:
            tb = batch8                        # single grid step
    else:
        tb = tb_cap                            # largest tile that fits budget
    batch_pad = _round_up(batch, tb)
    if batch_pad != batch:
        x = jnp.pad(x, ((0, batch_pad - batch), (0, 0)))
    grid = (batch_pad // tb,)

    # --- VMEM limit from actual usage (not a hard-coded constant) ----------
    vmem_needed = (2 * tb * in_dim * x_bytes           # x tile, 2 buffers
                   + 2 * tb * out_pad * out_bytes      # out tile, 2 buffers
                   + 2 * tb * max_width * (4 + 2)      # intermediate h
                   + weight_bytes + bias_bytes)        # resident params
    vmem_limit = int(min(max(int(vmem_needed * 1.5), 16 << 20), 56 << 20))
    # TODO(synk): pick the cap per generation via pltpu.get_tpu_info()
    # (~100 MiB is fine on v5e/v6e's 128 MiB VMEM; ~56 MiB keeps headroom on
    # v7x's 64 MiB).

    # --- Cost hint for XLA when embedded in a larger jitted graph ----------
    flops = 2 * batch_pad * sum(w.shape[0] * w.shape[1] for w in weights)
    bytes_accessed = (batch_pad * in_dim * x_bytes + weight_bytes + bias_bytes
                      + batch_pad * out_pad * out_bytes)
    cost = pl.CostEstimate(flops=flops, transcendentals=0,
                           bytes_accessed=bytes_accessed)

    kernel = functools.partial(
        _fused_mlp_kernel,
        num_layers=len(weights),
        relu_flags=tuple(relu_flags),
    )

    args = [x]
    for w, b in zip(weights, biases):
        args += [w, b]

    def build_call(single_buffer_params: bool):
        # Input activations: tiled over batch; feature dim = full array (the
        # full-dim exception covers the unpadded in_dim).
        in_specs = [pl.BlockSpec((tb, in_dim), lambda i: (i, 0))]
        extra = {"pipeline_mode": pl.Buffered(1)} if single_buffer_params else {}
        # Weights / biases: full-array blocks with constant index maps, DMA'd
        # once and VMEM-resident across all batch tiles; single-buffered since
        # their block never changes.
        # TODO(synk): for large models stream weights layer-by-layer via
        # memory_space=pl.ANY + pltpu.make_async_copy (or a layer grid axis)
        # instead of holding them all resident — matters first on v7x (64 MiB).
        for w, b in zip(weights, biases):
            k_in, k_out = w.shape
            in_specs.append(pl.BlockSpec((k_in, k_out), lambda i: (0, 0), **extra))
            in_specs.append(pl.BlockSpec((1, k_out), lambda i: (0, 0), **extra))
        return pl.pallas_call(
            kernel,
            out_shape=jax.ShapeDtypeStruct((batch_pad, out_pad), x.dtype),
            grid=grid,
            in_specs=in_specs,
            out_specs=pl.BlockSpec((tb, out_pad), lambda i: (i, 0)),
            compiler_params=pltpu.CompilerParams(
                dimension_semantics=("parallel",),   # batch tiles across TCs
                vmem_limit_bytes=vmem_limit,
            ),
            cost_estimate=cost,
        )

    try:
        out = build_call(True)(*args)
    except Exception:
        # pipeline_mode=pl.Buffered(1) not supported on this jax version:
        # fall back to default (double-buffered) parameter specs.
        out = build_call(False)(*args)

    # Drop batch padding and the lane padding of the final layer.
    return out[:batch, :out_dim]


class MLPPallas:
    """Mirror of the PyTorch MLP (eval-mode forward; dropout p=0 -> identity)."""

    def __init__(self, in_dim, out_dim, hidden=(), p=(0,), prior=None,
                 last=False, key=jax.random.PRNGKey(0), dtype=jnp.float32):
        # TODO(synk): dropout with p>0 (training mode) not implemented; with the
        # module's default p=[0] it is the identity, which is what we compute.
        self.last = last
        self.out_dim = out_dim
        dims = [in_dim] + list(hidden) + [out_dim]
        n_layers = len(dims) - 1

        self.params_logical = []   # unpadded f32 (for reference checks)
        self.weights = []          # padded bf16 [in(_pad), out_pad]
        self.biases = []           # padded f32  [1, out_pad]
        for i in range(n_layers):
            fan_in, fan_out = dims[i], dims[i + 1]
            key, kw, kb = jax.random.split(key, 3)
            bound = 1.0 / (fan_in ** 0.5)
            w = jax.random.uniform(kw, (fan_in, fan_out), dtype, -bound, bound)
            b = jax.random.uniform(kb, (fan_out,), dtype, -bound, bound)
            if prior and i == n_layers - 1:
                b = jnp.full((fan_out,), prior, dtype=dtype)
            self.params_logical.append((w, b))

            # Pad feature dims to 128-lane multiples once, at init.  The first
            # layer's input dim stays unpadded (matches the incoming x); all
            # padding is zero, so padded activation columns multiply only zero
            # weight rows and never corrupt the result.  Weights in bf16
            # (MXU-native operands, half the DMA/VMEM bytes); biases stay f32
            # because the bias/ReLU epilogue runs in f32.
            in_p = fan_in if i == 0 else _round_up(fan_in, 128)
            out_p = _round_up(fan_out, 128)
            w_p = jnp.zeros((in_p, out_p), jnp.bfloat16).at[:fan_in, :fan_out].set(
                w.astype(jnp.bfloat16))
            b_p = jnp.zeros((1, out_p), jnp.float32).at[0, :fan_out].set(
                b.astype(jnp.float32))
            self.weights.append(w_p)
            self.biases.append(b_p)

        # ReLU after every layer except (optionally) the last one.
        self.relu_flags = tuple(
            (i < n_layers - 1) or (not last) for i in range(n_layers))

    def __call__(self, x):
        return mlp_forward_pallas(x, self.weights, self.biases,
                                  self.relu_flags, self.out_dim)


if __name__ == "__main__":
    key = jax.random.PRNGKey(0)
    key, kx = jax.random.split(key)

    # Small shapes consistent with the module; batch=256 exercises the batch
    # grid (two tiles -> both TensorCores on v7x) and the bf16 MXU path.
    batch, in_dim, out_dim = 256, 16, 8
    hidden = [32]

    x = jax.random.normal(kx, (batch, in_dim), dtype=jnp.float32)

    model = MLPPallas(in_dim, out_dim, hidden=hidden, p=[0], prior=None,
                      last=False, key=key)

    out = jax.block_until_ready(model(x))

    # Pure-JAX reference mirroring the kernel's numerics: bf16 MXU operands,
    # f32 accumulation, f32 bias/ReLU epilogue, bf16 inter-layer activations.
    ref = x
    for i, (w, b) in enumerate(model.params_logical):
        ref = jnp.dot(ref.astype(jnp.bfloat16), w.astype(jnp.bfloat16),
                      preferred_element_type=jnp.float32) + b
        if model.relu_flags[i]:
            ref = jnp.maximum(ref, 0.0)

    assert out.shape == (batch, out_dim), out.shape
    max_err = float(jnp.max(jnp.abs(out - ref)))
    assert jnp.allclose(out, ref, atol=1e-4, rtol=1e-4), max_err

    print("KERNEL_OK")
</pallas_src>

<mosaic_0001>
module attributes {stable_mosaic.version = 11 : i64} {
  func.func @_fused_mlp_kernel(%arg0: i32, %arg1: memref<128x16xf32, #tpu.memory_space<vmem>>, %arg2: memref<16x128xbf16, #tpu.memory_space<vmem>>, %arg3: memref<1x128xf32, #tpu.memory_space<vmem>>, %arg4: memref<128x128xbf16, #tpu.memory_space<vmem>>, %arg5: memref<1x128xf32, #tpu.memory_space<vmem>>, %arg6: memref<128x128xf32, #tpu.memory_space<vmem>>) attributes {dimension_semantics = [#tpu.dimension_semantics<parallel>], iteration_bounds = array<i64: 2>, scalar_prefetch = 0 : i64, scratch_operands = 0 : i64, tpu.core_type = #tpu.core_type<tc>, window_params = [{transform_indices = @transform_0, window_bounds = array<i64: 128, 16>}, {pipeline_mode = #tpu.pipeline_mode<synchronous>, transform_indices = @transform_1, window_bounds = array<i64: 16, 128>}, {pipeline_mode = #tpu.pipeline_mode<synchronous>, transform_indices = @transform_2, window_bounds = array<i64: 1, 128>}, {pipeline_mode = #tpu.pipeline_mode<synchronous>, transform_indices = @transform_3, window_bounds = array<i64: 128, 128>}, {pipeline_mode = #tpu.pipeline_mode<synchronous>, transform_indices = @transform_4, window_bounds = array<i64: 1, 128>}, {transform_indices = @transform_5, window_bounds = array<i64: 128, 128>}]} {
    %c0 = arith.constant 0 : index
    %c0_0 = arith.constant 0 : index
    %0 = vector.load %arg1[%c0, %c0_0] : memref<128x16xf32, #tpu.memory_space<vmem>>, vector<128x16xf32>
    %1 = arith.truncf %0 : vector<128x16xf32> to vector<128x16xbf16>
    %c0_1 = arith.constant 0 : index
    %c0_2 = arith.constant 0 : index
    %2 = vector.load %arg2[%c0_1, %c0_2] : memref<16x128xbf16, #tpu.memory_space<vmem>>, vector<16x128xbf16>
    %c0_3 = arith.constant 0 : index
    %c0_4 = arith.constant 0 : index
    %3 = vector.load %arg3[%c0_3, %c0_4] : memref<1x128xf32, #tpu.memory_space<vmem>>, vector<1x128xf32>
    %cst = arith.constant dense<0.000000e+00> : vector<128x128xf32>
    %4 = tpu.matmul %1, %2, %cst {dimension_numbers = #tpu.dot_dimension_numbers<[1], [0], [0], [1], [0, 0, 1, 1], [], []>} : vector<128x16xbf16>, vector<16x128xbf16>, vector<128x128xf32> -> vector<128x128xf32>
    %5 = vector.broadcast %3 : vector<1x128xf32> to vector<128x128xf32>
    %6 = arith.addf %4, %5 : vector<128x128xf32>
    %cst_5 = arith.constant 0.000000e+00 : f32
    %7 = vector.broadcast %cst_5 : f32 to vector<128x128xf32>
    %8 = arith.maximumf %6, %7 : vector<128x128xf32>
    %9 = arith.truncf %8 : vector<128x128xf32> to vector<128x128xbf16>
    %c0_6 = arith.constant 0 : index
    %c0_7 = arith.constant 0 : index
    %10 = vector.load %arg4[%c0_6, %c0_7] : memref<128x128xbf16, #tpu.memory_space<vmem>>, vector<128x128xbf16>
    %c0_8 = arith.constant 0 : index
    %c0_9 = arith.constant 0 : index
    %11 = vector.load %arg5[%c0_8, %c0_9] : memref<1x128xf32, #tpu.memory_space<vmem>>, vector<1x128xf32>
    %cst_10 = arith.constant dense<0.000000e+00> : vector<128x128xf32>
    %12 = tpu.matmul %9, %10, %cst_10 {dimension_numbers = #tpu.dot_dimension_numbers<[1], [0], [0], [1], [0, 0, 1, 1], [], []>} : vector<128x128xbf16>, vector<128x128xbf16>, vector<128x128xf32> -> vector<128x128xf32>
    %13 = vector.broadcast %11 : vector<1x128xf32> to vector<128x128xf32>
    %14 = arith.addf %12, %13 : vector<128x128xf32>
    %cst_11 = arith.constant 0.000000e+00 : f32
    %15 = vector.broadcast %cst_11 : f32 to vector<128x128xf32>
    %16 = arith.maximumf %14, %15 : vector<128x128xf32>
    %c0_12 = arith.constant 0 : index
    %c0_13 = arith.constant 0 : index
    %17 = vector.load %arg6[%c0_12, %c0_13] : memref<128x128xf32, #tpu.memory_space<vmem>>, vector<128x128xf32>
    tpu.vector_store %arg6[%c0_12, %c0_13], %16 {strides = array<i32>} : memref<128x128xf32, #tpu.memory_space<vmem>>, vector<128x128xf32>,
    return
  }
  func.func @transform_0(%arg0: i32) -> (i32, i32) {
    %c0_i32 = arith.constant 0 : i32
    %c0_i32_0 = arith.constant 0 : i32
    return %arg0, %c0_i32 : i32, i32
  }
  func.func @transform_1(%arg0: i32) -> (i32, i32) {
    %c0_i32 = arith.constant 0 : i32
    %c0_i32_0 = arith.constant 0 : i32
    %c0_i32_1 = arith.constant 0 : i32
    return %c0_i32, %c0_i32_0 : i32, i32
  }
  func.func @transform_2(%arg0: i32) -> (i32, i32) {
    %c0_i32 = arith.constant 0 : i32
    %c0_i32_0 = arith.constant 0 : i32
    %c0_i32_1 = arith.constant 0 : i32
    return %c0_i32, %c0_i32_0 : i32, i32
  }
  func.func @transform_3(%arg0: i32) -> (i32, i32) {
    %c0_i32 = arith.constant 0 : i32
    %c0_i32_0 = arith.constant 0 : i32
    %c0_i32_1 = arith.constant 0 : i32
    return %c0_i32, %c0_i32_0 : i32, i32
  }
  func.func @transform_4(%arg0: i32) -> (i32, i32) {
    %c0_i32 = arith.constant 0 : i32
    %c0_i32_0 = arith.constant 0 : i32
    %c0_i32_1 = arith.constant 0 : i32
    return %c0_i32, %c0_i32_0 : i32, i32
  }
  func.func @transform_5(%arg0: i32) -> (i32, i32) {
    %c0_i32 = arith.constant 0 : i32
    %c0_i32_0 = arith.constant 0 : i32
    return %arg0, %c0_i32 : i32, i32
  }
}

module attributes {stable_mosaic.version = 11 : i64} {
  func.func @_fused_mlp_kernel(%arg0: i32, %arg1: memref<128x16xf32, #tpu.memory_space<vmem>>, %arg2: memref<16x128xbf16, #tpu.memory_space<vmem>>, %arg3: memref<1x128xf32, #tpu.memory_space<vmem>>, %arg4: memref<128x128xbf16, #tpu.memory_space<vmem>>, %arg5: memref<1x128xf32, #tpu.memory_space<vmem>>, %arg6: memref<128x128xf32, #tpu.memory_space<vmem>>) attributes {dimension_semantics = [#tpu.dimension_semantics<parallel>], iteration_bounds = array<i64: 2>, scalar_prefetch = 0 : i64, scratch_operands = 0 : i64, tpu.core_type = #tpu.core_type<tc>, window_params = [{transform_indices = @transform_0, window_bounds = array<i64: 128, 16>}, {pipeline_mode = #tpu.pipeline_mode<synchronous>, transform_indices = @transform_1, window_bounds = array<i64: 16, 128>}, {pipeline_mode = #tpu.pipeline_mode<synchronous>, transform_indices = @transform_2, window_bounds = array<i64: 1, 128>}, {pipeline_mode = #tpu.pipeline_mode<synchronous>, transform_indices = @transform_3, window_bounds = array<i64: 128, 128>}, {pipeline_mode = #tpu.pipeline_mode<synchronous>, transform_indices = @transform_4, window_bounds = array<i64: 1, 128>}, {transform_indices = @transform_5, window_bounds = array<i64: 128, 128>}]} {
    %c0 = arith.constant 0 : index
    %c0_0 = arith.constant 0 : index
    %0 = vector.load %arg1[%c0, %c0_0] : memref<128x16xf32, #tpu.memory_space<vmem>>, vector<128x16xf32>
    %1 = arith.truncf %0 : vector<128x16xf32> to vector<128x16xbf16>
    %c0_1 = arith.constant 0 : index
    %c0_2 = arith.constant 0 : index
    %2 = vector.load %arg2[%c0_1, %c0_2] : memref<16x128xbf16, #tpu.memory_space<vmem>>, vector<16x128xbf16>
    %c0_3 = arith.constant 0 : index
    %c0_4 = arith.constant 0 : index
    %3 = vector.load %arg3[%c0_3, %c0_4] : memref<1x128xf32, #tpu.memory_space<vmem>>, vector<1x128xf32>
    %cst = arith.constant dense<0.000000e+00> : vector<128x128xf32>
    %4 = tpu.matmul %1, %2, %cst {dimension_numbers = #tpu.dot_dimension_numbers<[1], [0], [0], [1], [0, 0, 1, 1], [], []>} : vector<128x16xbf16>, vector<16x128xbf16>, vector<128x128xf32> -> vector<128x128xf32>
    %5 = vector.broadcast %3 : vector<1x128xf32> to vector<128x128xf32>
    %6 = arith.addf %4, %5 : vector<128x128xf32>
    %cst_5 = arith.constant 0.000000e+00 : f32
    %7 = vector.broadcast %cst_5 : f32 to vector<128x128xf32>
    %8 = arith.maximumf %6, %7 : vector<128x128xf32>
    %9 = arith.truncf %8 : vector<128x128xf32> to vector<128x128xbf16>
    %c0_6 = arith.constant 0 : index
    %c0_7 = arith.constant 0 : index
    %10 = vector.load %arg4[%c0_6, %c0_7] : memref<128x128xbf16, #tpu.memory_space<vmem>>, vector<128x128xbf16>
    %c0_8 = arith.constant 0 : index
    %c0_9 = arith.constant 0 : index
    %11 = vector.load %arg5[%c0_8, %c0_9] : memref<1x128xf32, #tpu.memory_space<vmem>>, vector<1x128xf32>
    %cst_10 = arith.constant dense<0.000000e+00> : vector<128x128xf32>
    %12 = tpu.matmul %9, %10, %cst_10 {dimension_numbers = #tpu.dot_dimension_numbers<[1], [0], [0], [1], [0, 0, 1, 1], [], []>} : vector<128x128xbf16>, vector<128x128xbf16>, vector<128x128xf32> -> vector<128x128xf32>
    %13 = vector.broadcast %11 : vector<1x128xf32> to vector<128x128xf32>
    %14 = arith.addf %12, %13 : vector<128x128xf32>
    %cst_11 = arith.constant 0.000000e+00 : f32
    %15 = vector.broadcast %cst_11 : f32 to vector<128x128xf32>
    %16 = arith.maximumf %14, %15 : vector<128x128xf32>
    %c0_12 = arith.constant 0 : index
    %c0_13 = arith.constant 0 : index
    %17 = vector.load %arg6[%c0_12, %c0_13] : memref<128x128xf32, #tpu.memory_space<vmem>>, vector<128x128xf32>
    tpu.vector_store %arg6[%c0_12, %c0_13], %16 {strides = array<i32>} : memref<128x128xf32, #tpu.memory_space<vmem>>, vector<128x128xf32>,
    return
  }
  func.func @transform_0(%arg0: i32) -> (i32, i32) {
    %c0_i32 = arith.constant 0 : i32
    %c0_i32_0 = arith.constant 0 : i32
    return %arg0, %c0_i32 : i32, i32
  }
  func.func @transform_1(%arg0: i32) -> (i32, i32) {
    %c0_i32 = arith.constant 0 : i32
    %c0_i32_0 = arith.constant 0 : i32
    %c0_i32_1 = arith.constant 0 : i32
    return %c0_i32, %c0_i32_0 : i32, i32
  }
  func.func @transform_2(%arg0: i32) -> (i32, i32) {
    %c0_i32 = arith.constant 0 : i32
    %c0_i32_0 = arith.constant 0 : i32
    %c0_i32_1 = arith.constant 0 : i32
    return %c0_i32, %c0_i32_0 : i32, i32
  }
  func.func @transform_3(%arg0: i32) -> (i32, i32) {
    %c0_i32 = arith.constant 0 : i32
    %c0_i32_0 = arith.constant 0 : i32
    %c0_i32_1 = arith.constant 0 : i32
    return %c0_i32, %c0_i32_0 : i32, i32
  }
  func.func @transform_4(%arg0: i32) -> (i32, i32) {
    %c0_i32 = arith.constant 0 : i32
    %c0_i32_0 = arith.constant 0 : i32
    %c0_i32_1 = arith.constant 0 : i32
    return %c0_i32, %c0_i32_0 : i32, i32
  }
  func.func @transform_5(%arg0: i32) -> (i32, i32) {
    %c0_i32 = arith.constant 0 : i32
    %c0_i32_0 = arith.constant 0 : i32
    return %arg0, %c0_i32 : i32, i32
  }
}

</mosaic_0001>

<bundles_post_ra>
// kernel: tpu_custom_call.1
= control target key start
LH: loop header
LB: loop body
LE: loop exit
PB: predicated region body
PF: predicated region fallthrough
CT: control target
= control target key end

     0   :  { %10 = vsyncpa [#allocation3], 0  ;;  %s1142_s0 = inlined_call_operand.vmem [shape: f32[256,16], index: 0, kind: input, shape index: {}]   ;;  %s1143_s1 = inlined_call_operand.vmem [shape: bf16[16,128], index: 1, kind: input, shape index: {}]   ;;  %s1144_s2 = inlined_call_operand.vmem [shape: f32[1,128], index: 2, kind: input, shape index: {}]   ;;  %s1145_s3 = inlined_call_operand.vmem [shape: bf16[128,128], index: 3, kind: input, shape index: {}]   ;;  %s1146_s4 = inlined_call_operand.vmem [shape: f32[1,128], index: 4, kind: input, shape index: {}]   ;;  %s1147_s5 = inlined_call_operand.hbm [shape: f32[256,128], index: 5, kind: output, shape index: {}]  }
   0x1   :  { %12 = vsyncpa [#allocation3 + $0x1], 0  ;;  %s958_s18 = smov 0   ;;  %s960_s19 = smov 0  }
   0x2   :  { %s962_s20 = smov 0   ;;  %s964_s21 = smov 0  }
   0x3 LB: > { %s979_s22 = sadd.s32 4294967295, %s923_s21   ;;  %s688_s23 = sadd.s32 4294967294, %s923_s21   ;;  %s923_s21 = sphi %s964_s21, %s1153_s21   ;;  %s919_s20 = sphi %s962_s20, %s1152_s20   ;;  %s915_s19 = sphi %s960_s19, %s1151_s19   ;;  %s911_s18 = sphi %s958_s18, %s1150_s18  }
   0x4   : > { %s983_s24 = sadd.s32 1, %s923_s21   ;;  %s135_s25 = sadd.s32 1, %s919_s20 }
   0x5   : > { %s132_s26 = ssub.s32 %s923_s21, %s983_s24  ;;  %p145_p0 = scmp.ne.s32.totalorder %s919_s20, %s915_s19 }
   0x6   : > { %p133_p1 = scmp.eq.s32.totalorder %s132_s26, 0  ;;  %p146_p2 = scmp.eq.s32.totalorder %s979_s22, 1 }
   0x7   : > { %p151_p3 = scmp.ne.s32.totalorder %s915_s19, %s911_s18  ;;  %p152_p4 = scmp.eq.s32.totalorder %s688_s23, 1 }
   0x8   : > { %s994_s27 = scalar_select %p133_p1, %s919_s20, %s135_s25  }
   0x9   : > { %p996_p5 = por %p146_p2, %p145_p0  ;;  %p1000_p6 = por %p152_p4, %p151_p3 }
   0xa   : > { %p691_p7 = scmp.ge.s32.totalorder %s923_s21, 1  ;;  %p191_p8 = scmp.lt.s32.totalorder %s923_s21, 3 }
   0xc   : > { %p192_p9 = pnand %p691_p7, %p191_p8 }
   0xd   : > { %v852_v0 = vld [vmem:[%s1143_s1] sm:$0xff] (!%p192_p9)   ;;  %s693_s7 = sshll.u32 (!%p192_p9), %s979_s22, 4  ;;  %v854_v2 = vld [vmem:[%s1145_s3 + $0x8] sm:$0xff] (!%p192_p9)   ;;  %v855_v3 = vld [vmem:[%s1145_s3 + $0x10] sm:$0xff] (!%p192_p9)   ;;  %vm266_vm0 = vcmask (!%p192_p9), 130048   ;;  %s216_s14 = sand.u32 (!%p192_p9), 1, %s915_s19  }
   0xe   : > { %195 = sbr.rel (%p192_p9) target bundleno = 508 (0x1fc), region = 40  ;;  %p220_p10 = scmp.lt.s32.totalorder (!%p192_p9), %s693_s7, 31  ;;  %745 = vmatprep.subr.bf16.mxu0 (!%p192_p9), %v852_v0  ;;  %v853_v1 = vld [vmem:[%s1145_s3] sm:$0xff] (!%p192_p9)   ;;  %v856_v15 = vld [vmem:[%s1145_s3 + $0x18] sm:$0xff] (!%p192_p9)   ;;  %v858_v23 = vld [vmem:[%s1145_s3 + $0x28] sm:$0xff] (!%p192_p9)  }
   0xf   : > { %746 = vmatpush3.bf16.msra.mxu0 (!%p192_p9), %v852_v0  ;;  %795 = vmatprep.subr.bf16.mxu1 (!%p192_p9), %v853_v1  ;;  %v857_v20 = vld [vmem:[%s1145_s3 + $0x20] sm:$0xff] (!%p192_p9)   ;;  %v859_v31 = vld [vmem:[%s1145_s3 + $0x30] sm:$0xff] (!%p192_p9)   ;;  %v860_v32 = vld [vmem:[%s1145_s3 + $0x38] sm:$0xff] (!%p192_p9)   ;;  %s692_s17 = sshll.u32 (!%p192_p9), %s216_s14, 7  ;;  %s719_s25 = sshll.u32 (!%p192_p9), %s979_s22, 11 }
  0x10   : > { %763 = vmatprep.subr.bf16.mxu0 (!%p192_p9), %v853_v1  ;;  %803 = vmatpush3.bf16.msra.mxu1 (!%p192_p9), %v853_v1  ;;  %v695_v33 = vld [vmem:[%s1144_s2] ss:$0 sm:$0xff] (!%p192_p9)  ;;  %s1072_s23 = scalar_lea.vmem (!%p192_p9), [#allocation2], %s692_s17  ;;  %s1101_s22 = scalar_lea.sflag (!%p192_p9), [#allocation3], %s216_s14 }
  0x11   : > { %796 = vmatprep.subr.bf16.mxu1 (!%p192_p9), %v854_v2  ;;  %s626_s26 = sshll.u32 (!%p192_p9), %s1072_s23, 4  ;;  %s925_s9 = smov (!%p192_p9), [#allocation2]   ;;  %s1094_s26 = int_to_ptr.vmem [resolvable:$true] %s626_s26 }
  0x12   : > { %s861_s8 = scalar_lea.vmem (!%p192_p9), %s1094_s26, 2048  ;;  %s865_s10 = sshll.u32 (!%p192_p9), %s925_s9, 4  ;;  %s866_s10 = int_to_ptr.vmem [resolvable:$false] %s865_s10 }
  0x13   : > { %p862_p11 = scmp.ne.s32.totalorder (!%p192_p9), %s1094_s26, %s861_s8  ;;  %s867_s11 = scalar_lea.vmem (!%p192_p9), %s866_s10, 4096 }
  0x14   : > { %804 = vmatpush3.bf16.msra.mxu1 (!%p192_p9), %v854_v2  ;;  %p868_p0 = scmp.lt.s32.totalorder (!%p192_p9), %s1094_s26, %s866_s10  ;;  %p869_p1 = scmp.lt.s32.totalorder (!%p192_p9), %s867_s11, %s861_s8 }
  0x15   : > { %s1155_s7 = smov (!%p220_p10, %s693_s7), 31  ;;  %797 = vmatprep.subr.bf16.mxu1 %v855_v3  ;;  %p863_p12 = pnand %p862_p11, %p996_p5 }
  0x16   : > { %s694_s12 = sshll.u32 %s1155_s7, 3  ;;  %s1092_s7 = scalar_lea.hbm %s1147_s5, %s719_s25 }
  0x17   : > { %s1019_s15 = scalar_lea.vmem %s1142_s0, %s694_s12  ;;  %p864_p13 = pneg %p863_p12 }
  0x18   : > { %v227_v4 = vld [vmem:[%s1019_s15] sm:$0xff]  ;;  %v228_v5 = vld [vmem:[%s1019_s15 + $0x8] sm:$0xff]  ;;  %v229_v6 = vld [vmem:[%s1019_s15 + $0x10] sm:$0xff]  ;;  %805 = vmatpush3.bf16.msra.mxu1 %v855_v3  ;;  %p870_p2 = por %p869_p1, %p868_p0 }
  0x19   : > { %v243_v7 = vpack.c.bf16 %v228_v5, %v227_v4  ;;  %v230_v8 = vld [vmem:[%s1019_s15 + $0x18] sm:$0xff]  ;;  %v231_v9 = vld [vmem:[%s1019_s15 + $0x20] sm:$0xff]  ;;  %v232_v10 = vld [vmem:[%s1019_s15 + $0x28] sm:$0xff]  ;;  %798 = vmatprep.subr.bf16.mxu1 %v856_v15 }
  0x1a   : > { %v244_v11 = vpack.c.bf16 %v230_v8, %v229_v6  ;;  %v245_v12 = vpack.c.bf16 %v232_v10, %v231_v9  ;;  %v233_v13 = vld [vmem:[%s1019_s15 + $0x30] sm:$0xff]  ;;  %v234_v14 = vld [vmem:[%s1019_s15 + $0x38] sm:$0xff]  ;;  %v235_v16 = vld [vmem:[%s1019_s15 + $0x40] sm:$0xff]  ;;  %p871_p3 = pnand %p870_p2, %p864_p13 }
  0x1b   : > { %747 = vmatprep.mubr.msk.bf16.mxu0 %vm266_vm0, %v243_v7  ;;  %v236_v17 = vld [vmem:[%s1019_s15 + $0x48] sm:$0xff]  ;;  %v246_v18 = vpack.c.bf16 %v234_v14, %v233_v13  ;;  %v237_v21 = vld [vmem:[%s1019_s15 + $0x50] sm:$0xff]  ;;  %v238_v22 = vld [vmem:[%s1019_s15 + $0x58] sm:$0xff] }
  0x1c   : > { %748 = vmatmul.mubr.msk.bf16.vlgmr.msra.gmra.mrb[0].mxu0 %vm266_vm0, %v244_v11  ;;  %v247_v19 = vpack.c.bf16 %v236_v17, %v235_v16  ;;  %806 = vmatpush3.bf16.msra.mxu1 %v856_v15  ;;  %v239_v24 = vld [vmem:[%s1019_s15 + $0x60] sm:$0xff]  ;;  %v240_v25 = vld [vmem:[%s1019_s15 + $0x68] sm:$0xff]  ;;  %v248_v26 = vpack.c.bf16 %v238_v22, %v237_v21  ;;  %v241_v28 = vld [vmem:[%s1019_s15 + $0x70] sm:$0xff] }
  0x1d   : > { %751 = vmatprep.mubr.msk.bf16.mxu0 %vm266_vm0, %v245_v12  ;;  %764 = vmatpush3.bf16.msra.mxu0 %v853_v1  ;;  %v249_v27 = vpack.c.bf16 %v240_v25, %v239_v24  ;;  %v242_v29 = vld [vmem:[%s1019_s15 + $0x78] sm:$0xff] }
  0x1e   : > { %765 = vmatprep.subr.bf16.mxu0 %v854_v2  ;;  %799 = vmatprep.subr.bf16.mxu1 %v857_v20  ;;  %v250_v30 = vpack.c.bf16 %v242_v29, %v241_v28 }
  0x20   : > { %807 = vmatpush3.bf16.msra.mxu1 %v857_v20 }
  0x21   : > { %766 = vmatpush3.bf16.msra.mxu0 %v854_v2  ;;  %800 = vmatprep.subr.bf16.mxu1 %v858_v23 }
  0x22   : > { %767 = vmatprep.subr.bf16.mxu0 %v855_v3 }
  0x24   : > { %752 = vmatmul.mubr.msk.bf16.gmra.mrb[4].mxu0 %vm266_vm0, %v246_v18  ;;  %808 = vmatpush3.bf16.msra.mxu1 %v858_v23 }
  0x25   : > { %755 = vmatprep.mubr.msk.bf16.mxu0 %vm266_vm0, %v247_v19  ;;  %768 = vmatpush3.bf16.msra.mxu0 %v855_v3 }
  0x26   : > { %769 = vmatprep.subr.bf16.mxu0 %v856_v15  ;;  %801 = vmatprep.subr.bf16.mxu1 %v859_v31 }
  0x28   : > { %809 = vmatpush3.bf16.msra.mxu1 %v859_v31 }
  0x29   : > { %770 = vmatpush3.bf16.msra.mxu0 %v856_v15  ;;  %802 = vmatprep.subr.bf16.mxu1 %v860_v32 }
  0x2a   : > { %771 = vmatprep.subr.bf16.mxu0 %v857_v20 }
  0x2c   : > { %756 = vmatmul.mubr.msk.bf16.gmra.mrb[8].mxu0 %vm266_vm0, %v248_v26  ;;  %810 = vmatpush3.bf16.msra.mxu1 %v860_v32  ;;  %v705_v26 = vld [vmem:[%s1146_s4] ss:$0 sm:$0xff] }
  0x2d   : > { %759 = vmatprep.mubr.msk.bf16.mxu0 %vm266_vm0, %v249_v27  ;;  %772 = vmatpush3.bf16.msra.mxu0 %v857_v20 }
  0x2e   : > { %773 = vmatprep.subr.bf16.mxu0 %v858_v23 }
  0x31   : > { %774 = vmatpush3.bf16.msra.mxu0 %v858_v23 }
  0x32   : > { %775 = vmatprep.subr.bf16.mxu0 %v859_v31 }
  0x34   : > { %760 = vmatmul.mubr.msk.bf16.gmra.mrb[12].mxu0 %vm266_vm0, %v250_v30 }
  0x35   : > { %776 = vmatpush3.bf16.msra.mxu0 %v859_v31 }
  0x36   : > { %777 = vmatprep.subr.bf16.mxu0 %v860_v32 }
  0x39   : > { %778 = vmatpush3.bf16.msra.mxu0 %v860_v32 }
  0xef   : > { %v749_v34 = vpop.f32.mrb[0].mxu0 }
  0xf0   : > { %v334_v35 = vadd.f32 %v749_v34, %v695_v33  ;;  %v325_v36 = vpop.f32.mrb[1].mxu0 }
  0xf1   : > { %v326_v37 = vadd.f32 %v695_v33, %v325_v36  ;;  %v750_v38 = vpop.f32.mrb[2].mxu0 }
  0xf2   : > { %v337_v39 = vadd.f32 %v750_v38, %v695_v33  ;;  %v328_v40 = vpop.f32.mrb[3].mxu0  ;;  %v390_v42 = vmax.f32 %v334_v35, 0.0 }
  0xf3   : > { %v329_v41 = vadd.f32 %v695_v33, %v328_v40  ;;  %v388_v44 = vmax.f32 %v326_v37, 0.0 }
  0xf4   : > { %v391_v43 = vmax.f32 %v337_v39, 0.0 }
  0xf5   : > { %v389_v45 = vmax.f32 %v329_v41, 0.0 }
  0xf6   : > { %v405_v46 = vpack.c.bf16 %v391_v43, %v390_v42 }
  0xf7   : > { %v404_v47 = vpack.c.bf16 %v389_v45, %v388_v44  ;;  %v753_v48 = vpop.f32.mrb[4].mxu0 }
  0xf8   : > { %v350_v49 = vadd.f32 %v753_v48, %v695_v33  ;;  %v341_v50 = vpop.f32.mrb[5].mxu0 }
  0xf9   : > { %v342_v51 = vadd.f32 %v695_v33, %v341_v50  ;;  %v754_v52 = vpop.f32.mrb[6].mxu0  ;;  %779 = vmatprep.mubr.bf16.mxu0 %v404_v47 }
  0xfa   : > { %v353_v53 = vadd.f32 %v754_v52, %v695_v33  ;;  %v344_v54 = vpop.f32.mrb[7].mxu0  ;;  %780 = vmatmul.mubr.bf16.vlgmr.msra.gmra.mrb[16].mxu0 %v405_v46  ;;  %v394_v56 = vmax.f32 %v350_v49, 0.0 }
  0xfb   : > { %v345_v55 = vadd.f32 %v695_v33, %v344_v54  ;;  %v392_v58 = vmax.f32 %v342_v51, 0.0 }
  0xfc   : > { %v395_v57 = vmax.f32 %v353_v53, 0.0 }
  0xfd   : > { %v393_v59 = vmax.f32 %v345_v55, 0.0 }
  0xfe   : > { %v407_v60 = vpack.c.bf16 %v395_v57, %v394_v56 }
  0xff   : > { %v757_v61 = vpop.f32.mrb[8].mxu0  ;;  %v406_v62 = vpack.c.bf16 %v393_v59, %v392_v58 }
 0x100   : > { %v366_v63 = vadd.f32 %v757_v61, %v695_v33  ;;  %v357_v0 = vpop.f32.mrb[9].mxu0 }
 0x101   : > { %v358_v1 = vadd.f32 %v695_v33, %v357_v0  ;;  %v758_v2 = vpop.f32.mrb[10].mxu0  ;;  %783 = vmatprep.mubr.bf16.mxu1 %v406_v62 }
 0x102   : > { %v369_v3 = vadd.f32 %v758_v2, %v695_v33  ;;  %v360_v4 = vpop.f32.mrb[11].mxu0  ;;  %784 = vmatmul.mubr.bf16.vlgmr.msra.gmra.mrb[0].mxu1 %v407_v60  ;;  %v398_v6 = vmax.f32 %v366_v63, 0.0 }
 0x103   : > { %v361_v5 = vadd.f32 %v695_v33, %v360_v4  ;;  %v396_v8 = vmax.f32 %v358_v1, 0.0 }
 0x104   : > { %v399_v7 = vmax.f32 %v369_v3, 0.0 }
 0x105   : > { %v397_v9 = vmax.f32 %v361_v5, 0.0 }
 0x106   : > { %v409_v10 = vpack.c.bf16 %v399_v7, %v398_v6 }
 0x107   : > { %v408_v11 = vpack.c.bf16 %v397_v9, %v396_v8  ;;  %v761_v12 = vpop.f32.mrb[12].mxu0 }
 0x108   : > { %v382_v13 = vadd.f32 %v761_v12, %v695_v33  ;;  %v373_v14 = vpop.f32.mrb[13].mxu0 }
 0x109   : > { %v374_v15 = vadd.f32 %v695_v33, %v373_v14  ;;  %v762_v16 = vpop.f32.mrb[14].mxu0  ;;  %787 = vmatprep.mubr.bf16.mxu1 %v408_v11 }
 0x10a   : > { %v385_v17 = vadd.f32 %v762_v16, %v695_v33  ;;  %v376_v18 = vpop.f32.mrb[15].mxu0  ;;  %788 = vmatmul.mubr.bf16.gmra.mrb[4].mxu1 %v409_v10  ;;  %v402_v20 = vmax.f32 %v382_v13, 0.0 }
 0x10b   : > { %v377_v19 = vadd.f32 %v695_v33, %v376_v18  ;;  %v400_v22 = vmax.f32 %v374_v15, 0.0 }
 0x10c   : > { %v403_v21 = vmax.f32 %v385_v17, 0.0 }
 0x10d   : > { %v401_v23 = vmax.f32 %v377_v19, 0.0 }
 0x10e   : > { %v411_v24 = vpack.c.bf16 %v403_v21, %v402_v20 }
 0x10f   : > { %v410_v25 = vpack.c.bf16 %v401_v23, %v400_v22 }
 0x111   : > { %791 = vmatprep.mubr.bf16.mxu1 %v410_v25 }
 0x112   : > { %792 = vmatmul.mubr.bf16.gmra.mrb[8].mxu1 %v411_v24 }
 0x1cd   : > { %v781_v27 = vpop.f32.mrb[16].mxu0 }
 0x1ce   : > { %v526_v28 = vadd.f32 %v781_v27, %v705_v26  ;;  %v517_v29 = vpop.f32.mrb[17].mxu0 }
 0x1cf   : > { %v518_v30 = vadd.f32 %v705_v26, %v517_v29  ;;  %v782_v31 = vpop.f32.mrb[18].mxu0 }
 0x1d0   : > { %v582_v32 = vmax.f32 %v526_v28, 0.0  ;;  %v529_v33 = vadd.f32 %v782_v31, %v705_v26  ;;  %v520_v34 = vpop.f32.mrb[19].mxu0 }
 0x1d1   : > { %v580_v35 = vmax.f32 %v518_v30, 0.0  ;;  %v521_v36 = vadd.f32 %v705_v26, %v520_v34 }
 0x1d2   : > { %598 = vst [vmem:[%s1072_s23 + $0x10] sm:$0xff] %v582_v32  ;;  %v583_v37 = vmax.f32 %v529_v33, 0.0 }
 0x1d3   : > { %596 = vst [vmem:[%s1072_s23] sm:$0xff] %v580_v35  ;;  %v581_v38 = vmax.f32 %v521_v36, 0.0 }
 0x1d4   : > { %599 = vst [vmem:[%s1072_s23 + $0x18] sm:$0xff] %v583_v37 }
 0x1d5   : > { %597 = vst [vmem:[%s1072_s23 + $0x8] sm:$0xff] %v581_v38  ;;  %v785_v39 = vpop.f32.mrb[0].mxu1 }
 0x1d6   : > { %v542_v40 = vadd.f32 %v785_v39, %v705_v26  ;;  %v533_v41 = vpop.f32.mrb[1].mxu1 }
 0x1d7   : > { %v534_v42 = vadd.f32 %v705_v26, %v533_v41  ;;  %v786_v43 = vpop.f32.mrb[2].mxu1 }
 0x1d8   : > { %v586_v44 = vmax.f32 %v542_v40, 0.0  ;;  %v545_v45 = vadd.f32 %v786_v43, %v705_v26  ;;  %v536_v46 = vpop.f32.mrb[3].mxu1 }
 0x1d9   : > { %v584_v47 = vmax.f32 %v534_v42, 0.0  ;;  %v537_v48 = vadd.f32 %v705_v26, %v536_v46 }
 0x1da   : > { %602 = vst [vmem:[%s1072_s23 + $0x30] sm:$0xff] %v586_v44  ;;  %v587_v49 = vmax.f32 %v545_v45, 0.0 }
 0x1db   : > { %600 = vst [vmem:[%s1072_s23 + $0x20] sm:$0xff] %v584_v47  ;;  %v585_v50 = vmax.f32 %v537_v48, 0.0 }
 0x1dc   : > { %603 = vst [vmem:[%s1072_s23 + $0x38] sm:$0xff] %v587_v49 }
 0x1dd   : > { %601 = vst [vmem:[%s1072_s23 + $0x28] sm:$0xff] %v585_v50  ;;  %v789_v51 = vpop.f32.mrb[4].mxu1 }
 0x1de   : > { %v558_v52 = vadd.f32 %v789_v51, %v705_v26  ;;  %v549_v53 = vpop.f32.mrb[5].mxu1 }
 0x1df   : > { %v550_v54 = vadd.f32 %v705_v26, %v549_v53  ;;  %v790_v55 = vpop.f32.mrb[6].mxu1 }
 0x1e0   : > { %v590_v56 = vmax.f32 %v558_v52, 0.0  ;;  %v561_v57 = vadd.f32 %v790_v55, %v705_v26  ;;  %v552_v58 = vpop.f32.mrb[7].mxu1 }
 0x1e1   : > { %v588_v59 = vmax.f32 %v550_v54, 0.0  ;;  %v553_v60 = vadd.f32 %v705_v26, %v552_v58 }
 0x1e2   : > { %606 = vst [vmem:[%s1072_s23 + $0x50] sm:$0xff] %v590_v56  ;;  %v591_v61 = vmax.f32 %v561_v57, 0.0 }
 0x1e3   : > { %604 = vst [vmem:[%s1072_s23 + $0x40] sm:$0xff] %v588_v59  ;;  %v589_v62 = vmax.f32 %v553_v60, 0.0 }
 0x1e4   : > { %607 = vst [vmem:[%s1072_s23 + $0x58] sm:$0xff] %v591_v61 }
 0x1e5   : > { %605 = vst [vmem:[%s1072_s23 + $0x48] sm:$0xff] %v589_v62  ;;  %v793_v63 = vpop.f32.mrb[8].mxu1 }
 0x1e6   : > { %v574_v0 = vadd.f32 %v793_v63, %v705_v26  ;;  %v565_v1 = vpop.f32.mrb[9].mxu1 }
 0x1e7   : > { %v566_v2 = vadd.f32 %v705_v26, %v565_v1  ;;  %v794_v3 = vpop.f32.mrb[10].mxu1 }
 0x1e8   : > { %v594_v4 = vmax.f32 %v574_v0, 0.0  ;;  %v577_v5 = vadd.f32 %v794_v3, %v705_v26  ;;  %v568_v6 = vpop.f32.mrb[11].mxu1 }
 0x1e9   : > { %v592_v7 = vmax.f32 %v566_v2, 0.0  ;;  %v569_v8 = vadd.f32 %v705_v26, %v568_v6 }
 0x1ea   : > { %610 = vst [vmem:[%s1072_s23 + $0x70] sm:$0xff] %v594_v4  ;;  %v595_v9 = vmax.f32 %v577_v5, 0.0 }
 0x1eb   : > { %608 = vst [vmem:[%s1072_s23 + $0x60] sm:$0xff] %v592_v7  ;;  %v593_v10 = vmax.f32 %v569_v8, 0.0 }
 0x1ec   : > { %611 = vst [vmem:[%s1072_s23 + $0x78] sm:$0xff] %v595_v9 }
 0x1ed   : > { %609 = vst [vmem:[%s1072_s23 + $0x68] sm:$0xff] %v593_v10 }
 0x1ee   : > { %874 = shalt.err (!%p871_p3)
}
 0x1ef   : > { %s875_s12 = scalar_lea.hbm %s1092_s7, 2048  ;;  %s879_s15 = scalar_lea.hbm %s1147_s5, 4096 }
 0x1f0   : > { %p876_p4 = scmp.ne.s32.totalorder %s1092_s7, %s875_s12  ;;  %p880_p9 = scmp.lt.u32.totalorder %s1092_s7, %s1147_s5 }
 0x1f1   : > { %p881_p10 = scmp.lt.u32.totalorder %s879_s15, %s875_s12  ;;  %p883_p12 = scmp.lt.u32.totalorder %s875_s12, %s1092_s7 }
 0x1f2   : > { %p877_p7 = pnand %p876_p4, %p996_p5 }
 0x1f3   : > { %p882_p11 = por %p881_p10, %p880_p9 }
 0x1f4   : > { %p878_p8 = pneg %p877_p7 }
 0x1f5   : > { %p884_p13 = por %p883_p12, %p882_p11 }
 0x1f7   : > { %p885_p0 = pnand %p884_p13, %p878_p8 }
 0x1f9   : > { %888 = shalt.err (!%p885_p0)
}
 0x1fa   : > { %s926_s23 = smov 128   ;;  %s927_s25 = smov 8  }
 0x1fb   : > { %811 = dma.vmem_to_hbm [thread:$0]  (%p996_p5), %s1094_s26, 2048, %s1092_s7, %s1101_s22, %s926_s23, %s926_s23, %s927_s25  }
 0x1fc PF: > { %p817_p1 = scmp.ge.s32.totalorder %s923_s21, 2  ;;  %s641_s30 = sand.u32 1, %s911_s18  }
 0x1fd   : > { %s642_s6 = scalar_lea.sflag [#allocation3], %s641_s30 }
 0x1fe   : > { %p814_p2 = pnand %p817_p1, %p1000_p6 }
 0x200   : > { %906 = dma.done.wait (!%p814_p2), %s642_s6, 2048  }
 0x201   : > { %908 = vsyncadd (!%p814_p2), %s642_s6, 4294965248  ;;  %p15_p3 = scmp.ge.s32.totalorder %s983_s24, 4   ;;  %s1150_s18 = smov %s915_s19 }
 0x202   : > { %s1151_s19 = smov %s919_s20  ;;  %s1152_s20 = smov %s994_s27 }
 0x203   : > { %s1153_s21 = smov %s983_s24  ;;  %17 = sbr.rel (!%p15_p3) target bundleno = 3 (0x3), region = 75 }
 0x20a   :  { %647 = vsyncpa [#allocation3], 1 }
 0x20b   :  { %649 = vsyncpa [#allocation3 + $0x1], 1 }

// kernel: tpu_custom_call.1
= control target key start
LH: loop header
LB: loop body
LE: loop exit
PB: predicated region body
PF: predicated region fallthrough
CT: control target
= control target key end

     0   :  { %10 = vsyncpa [#allocation3], 0  ;;  %s1142_s0 = inlined_call_operand.vmem [shape: f32[256,16], index: 0, kind: input, shape index: {}]   ;;  %s1143_s1 = inlined_call_operand.vmem [shape: bf16[16,128], index: 1, kind: input, shape index: {}]   ;;  %s1144_s2 = inlined_call_operand.vmem [shape: f32[1,128], index: 2, kind: input, shape index: {}]   ;;  %s1145_s3 = inlined_call_operand.vmem [shape: bf16[128,128], index: 3, kind: input, shape index: {}]   ;;  %s1146_s4 = inlined_call_operand.vmem [shape: f32[1,128], index: 4, kind: input, shape index: {}]   ;;  %s1147_s5 = inlined_call_operand.hbm [shape: f32[256,128], index: 5, kind: output, shape index: {}]  }
   0x1   :  { %12 = vsyncpa [#allocation3 + $0x1], 0  ;;  %s958_s18 = smov 0   ;;  %s960_s19 = smov 0  }
   0x2   :  { %s962_s20 = smov 0   ;;  %s964_s21 = smov 0  }
   0x3 LB: > { %s979_s22 = sadd.s32 4294967295, %s923_s21   ;;  %s688_s23 = sadd.s32 4294967294, %s923_s21   ;;  %s923_s21 = sphi %s964_s21, %s1153_s21   ;;  %s919_s20 = sphi %s962_s20, %s1152_s20   ;;  %s915_s19 = sphi %s960_s19, %s1151_s19   ;;  %s911_s18 = sphi %s958_s18, %s1150_s18  }
   0x4   : > { %s983_s24 = sadd.s32 1, %s923_s21   ;;  %s135_s25 = sadd.s32 1, %s919_s20 }
   0x5   : > { %s132_s26 = ssub.s32 %s923_s21, %s983_s24  ;;  %p145_p0 = scmp.ne.s32.totalorder %s919_s20, %s915_s19 }
   0x6   : > { %p133_p1 = scmp.eq.s32.totalorder %s132_s26, 0  ;;  %p146_p2 = scmp.eq.s32.totalorder %s979_s22, 1 }
   0x7   : > { %p151_p3 = scmp.ne.s32.totalorder %s915_s19, %s911_s18  ;;  %p152_p4 = scmp.eq.s32.totalorder %s688_s23, 1 }
   0x8   : > { %s994_s27 = scalar_select %p133_p1, %s919_s20, %s135_s25  }
   0x9   : > { %p996_p5 = por %p146_p2, %p145_p0  ;;  %p1000_p6 = por %p152_p4, %p151_p3 }
   0xa   : > { %p691_p7 = scmp.ge.s32.totalorder %s923_s21, 1  ;;  %p191_p8 = scmp.lt.s32.totalorder %s923_s21, 3 }
   0xc   : > { %p192_p9 = pnand %p691_p7, %p191_p8 }
   0xd   : > { %v852_v0 = vld [vmem:[%s1143_s1] sm:$0xff] (!%p192_p9)   ;;  %s693_s7 = sshll.u32 (!%p192_p9), %s979_s22, 4  ;;  %v854_v2 = vld [vmem:[%s1145_s3 + $0x8] sm:$0xff] (!%p192_p9)   ;;  %v855_v3 = vld [vmem:[%s1145_s3 + $0x10] sm:$0xff] (!%p192_p9)   ;;  %vm266_vm0 = vcmask (!%p192_p9), 130048   ;;  %s216_s14 = sand.u32 (!%p192_p9), 1, %s915_s19  }
   0xe   : > { %195 = sbr.rel (%p192_p9) target bundleno = 508 (0x1fc), region = 40  ;;  %p220_p10 = scmp.lt.s32.totalorder (!%p192_p9), %s693_s7, 31  ;;  %745 = vmatprep.subr.bf16.mxu0 (!%p192_p9), %v852_v0  ;;  %v853_v1 = vld [vmem:[%s1145_s3] sm:$0xff] (!%p192_p9)   ;;  %v856_v15 = vld [vmem:[%s1145_s3 + $0x18] sm:$0xff] (!%p192_p9)   ;;  %v858_v23 = vld [vmem:[%s1145_s3 + $0x28] sm:$0xff] (!%p192_p9)  }
   0xf   : > { %746 = vmatpush3.bf16.msra.mxu0 (!%p192_p9), %v852_v0  ;;  %795 = vmatprep.subr.bf16.mxu1 (!%p192_p9), %v853_v1  ;;  %v857_v20 = vld [vmem:[%s1145_s3 + $0x20] sm:$0xff] (!%p192_p9)   ;;  %v859_v31 = vld [vmem:[%s1145_s3 + $0x30] sm:$0xff] (!%p192_p9)   ;;  %v860_v32 = vld [vmem:[%s1145_s3 + $0x38] sm:$0xff] (!%p192_p9)   ;;  %s692_s17 = sshll.u32 (!%p192_p9), %s216_s14, 7  ;;  %s719_s25 = sshll.u32 (!%p192_p9), %s979_s22, 11 }
  0x10   : > { %763 = vmatprep.subr.bf16.mxu0 (!%p192_p9), %v853_v1  ;;  %803 = vmatpush3.bf16.msra.mxu1 (!%p192_p9), %v853_v1  ;;  %v695_v33 = vld [vmem:[%s1144_s2] ss:$0 sm:$0xff] (!%p192_p9)  ;;  %s1072_s23 = scalar_lea.vmem (!%p192_p9), [#allocation2], %s692_s17  ;;  %s1101_s22 = scalar_lea.sflag (!%p192_p9), [#allocation3], %s216_s14 }
  0x11   : > { %796 = vmatprep.subr.bf16.mxu1 (!%p192_p9), %v854_v2  ;;  %s626_s26 = sshll.u32 (!%p192_p9), %s1072_s23, 4  ;;  %s925_s9 = smov (!%p192_p9), [#allocation2]   ;;  %s1094_s26 = int_to_ptr.vmem [resolvable:$true] %s626_s26 }
  0x12   : > { %s861_s8 = scalar_lea.vmem (!%p192_p9), %s1094_s26, 2048  ;;  %s865_s10 = sshll.u32 (!%p192_p9), %s925_s9, 4  ;;  %s866_s10 = int_to_ptr.vmem [resolvable:$false] %s865_s10 }
  0x13   : > { %p862_p11 = scmp.ne.s32.totalorder (!%p192_p9), %s1094_s26, %s861_s8  ;;  %s867_s11 = scalar_lea.vmem (!%p192_p9), %s866_s10, 4096 }
  0x14   : > { %804 = vmatpush3.bf16.msra.mxu1 (!%p192_p9), %v854_v2  ;;  %p868_p0 = scmp.lt.s32.totalorder (!%p192_p9), %s1094_s26, %s866_s10  ;;  %p869_p1 = scmp.lt.s32.totalorder (!%p192_p9), %s867_s11, %s861_s8 }
  0x15   : > { %s1155_s7 = smov (!%p220_p10, %s693_s7), 31  ;;  %797 = vmatprep.subr.bf16.mxu1 %v855_v3  ;;  %p863_p12 = pnand %p862_p11, %p996_p5 }
  0x16   : > { %s694_s12 = sshll.u32 %s1155_s7, 3  ;;  %s1092_s7 = scalar_lea.hbm %s1147_s5, %s719_s25 }
  0x17   : > { %s1019_s15 = scalar_lea.vmem %s1142_s0, %s694_s12  ;;  %p864_p13 = pneg %p863_p12 }
  0x18   : > { %v227_v4 = vld [vmem:[%s1019_s15] sm:$0xff]  ;;  %v228_v5 = vld [vmem:[%s1019_s15 + $0x8] sm:$0xff]  ;;  %v229_v6 = vld [vmem:[%s1019_s15 + $0x10] sm:$0xff]  ;;  %805 = vmatpush3.bf16.msra.mxu1 %v855_v3  ;;  %p870_p2 = por %p869_p1, %p868_p0 }
  0x19   : > { %v243_v7 = vpack.c.bf16 %v228_v5, %v227_v4  ;;  %v230_v8 = vld [vmem:[%s1019_s15 + $0x18] sm:$0xff]  ;;  %v231_v9 = vld [vmem:[%s1019_s15 + $0x20] sm:$0xff]  ;;  %v232_v10 = vld [vmem:[%s1019_s15 + $0x28] sm:$0xff]  ;;  %798 = vmatprep.subr.bf16.mxu1 %v856_v15 }
  0x1a   : > { %v244_v11 = vpack.c.bf16 %v230_v8, %v229_v6  ;;  %v245_v12 = vpack.c.bf16 %v232_v10, %v231_v9  ;;  %v233_v13 = vld [vmem:[%s1019_s15 + $0x30] sm:$0xff]  ;;  %v234_v14 = vld [vmem:[%s1019_s15 + $0x38] sm:$0xff]  ;;  %v235_v16 = vld [vmem:[%s1019_s15 + $0x40] sm:$0xff]  ;;  %p871_p3 = pnand %p870_p2, %p864_p13 }
  0x1b   : > { %747 = vmatprep.mubr.msk.bf16.mxu0 %vm266_vm0, %v243_v7  ;;  %v236_v17 = vld [vmem:[%s1019_s15 + $0x48] sm:$0xff]  ;;  %v246_v18 = vpack.c.bf16 %v234_v14, %v233_v13  ;;  %v237_v21 = vld [vmem:[%s1019_s15 + $0x50] sm:$0xff]  ;;  %v238_v22 = vld [vmem:[%s1019_s15 + $0x58] sm:$0xff] }
  0x1c   : > { %748 = vmatmul.mubr.msk.bf16.vlgmr.msra.gmra.mrb[0].mxu0 %vm266_vm0, %v244_v11  ;;  %v247_v19 = vpack.c.bf16 %v236_v17, %v235_v16  ;;  %806 = vmatpush3.bf16.msra.mxu1 %v856_v15  ;;  %v239_v24 = vld [vmem:[%s1019_s15 + $0x60] sm:$0xff]  ;;  %v240_v25 = vld [vmem:[%s1019_s15 + $0x68] sm:$0xff]  ;;  %v248_v26 = vpack.c.bf16 %v238_v22, %v237_v21  ;;  %v241_v28 = vld [vmem:[%s1019_s15 + $0x70] sm:$0xff] }
  0x1d   : > { %751 = vmatprep.mubr.msk.bf16.mxu0 %vm266_vm0, %v245_v12  ;;  %764 = vmatpush3.bf16.msra.mxu0 %v853_v1  ;;  %v249_v27 = vpack.c.bf16 %v240_v25, %v239_v24  ;;  %v242_v29 = vld [vmem:[%s1019_s15 + $0x78] sm:$0xff] }
  0x1e   : > { %765 = vmatprep.subr.bf16.mxu0 %v854_v2  ;;  %799 = vmatprep.subr.bf16.mxu1 %v857_v20  ;;  %v250_v30 = vpack.c.bf16 %v242_v29, %v241_v28 }
  0x20   : > { %807 = vmatpush3.bf16.msra.mxu1 %v857_v20 }
  0x21   : > { %766 = vmatpush3.bf16.msra.mxu0 %v854_v2  ;;  %800 = vmatprep.subr.bf16.mxu1 %v858_v23 }
  0x22   : > { %767 = vmatprep.subr.bf16.mxu0 %v855_v3 }
  0x24   : > { %752 = vmatmul.mubr.msk.bf16.gmra.mrb[4].mxu0 %vm266_vm0, %v246_v18  ;;  %808 = vmatpush3.bf16.msra.mxu1 %v858_v23 }
  0x25   : > { %755 = vmatprep.mubr.msk.bf16.mxu0 %vm266_vm0, %v247_v19  ;;  %768 = vmatpush3.bf16.msra.mxu0 %v855_v3 }
  0x26   : > { %769 = vmatprep.subr.bf16.mxu0 %v856_v15  ;;  %801 = vmatprep.subr.bf16.mxu1 %v859_v31 }
  0x28   : > { %809 = vmatpush3.bf16.msra.mxu1 %v859_v31 }
  0x29   : > { %770 = vmatpush3.bf16.msra.mxu0 %v856_v15  ;;  %802 = vmatprep.subr.bf16.mxu1 %v860_v32 }
  0x2a   : > { %771 = vmatprep.subr.bf16.mxu0 %v857_v20 }
  0x2c   : > { %756 = vmatmul.mubr.msk.bf16.gmra.mrb[8].mxu0 %vm266_vm0, %v248_v26  ;;  %810 = vmatpush3.bf16.msra.mxu1 %v860_v32  ;;  %v705_v26 = vld [vmem:[%s1146_s4] ss:$0 sm:$0xff] }
  0x2d   : > { %759 = vmatprep.mubr.msk.bf16.mxu0 %vm266_vm0, %v249_v27  ;;  %772 = vmatpush3.bf16.msra.mxu0 %v857_v20 }
  0x2e   : > { %773 = vmatprep.subr.bf16.mxu0 %v858_v23 }
  0x31   : > { %774 = vmatpush3.bf16.msra.mxu0 %v858_v23 }
  0x32   : > { %775 = vmatprep.subr.bf16.mxu0 %v859_v31 }
  0x34   : > { %760 = vmatmul.mubr.msk.bf16.gmra.mrb[12].mxu0 %vm266_vm0, %v250_v30 }
  0x35   : > { %776 = vmatpush3.bf16.msra.mxu0 %v859_v31 }
  0x36   : > { %777 = vmatprep.subr.bf16.mxu0 %v860_v32 }
  0x39   : > { %778 = vmatpush3.bf16.msra.mxu0 %v860_v32 }
  0xef   : > { %v749_v34 = vpop.f32.mrb[0].mxu0 }
  0xf0   : > { %v334_v35 = vadd.f32 %v749_v34, %v695_v33  ;;  %v325_v36 = vpop.f32.mrb[1].mxu0 }
  0xf1   : > { %v326_v37 = vadd.f32 %v695_v33, %v325_v36  ;;  %v750_v38 = vpop.f32.mrb[2].mxu0 }
  0xf2   : > { %v337_v39 = vadd.f32 %v750_v38, %v695_v33  ;;  %v328_v40 = vpop.f32.mrb[3].mxu0  ;;  %v390_v42 = vmax.f32 %v334_v35, 0.0 }
  0xf3   : > { %v329_v41 = vadd.f32 %v695_v33, %v328_v40  ;;  %v388_v44 = vmax.f32 %v326_v37, 0.0 }
  0xf4   : > { %v391_v43 = vmax.f32 %v337_v39, 0.0 }
  0xf5   : > { %v389_v45 = vmax.f32 %v329_v41, 0.0 }
  0xf6   : > { %v405_v46 = vpack.c.bf16 %v391_v43, %v390_v42 }
  0xf7   : > { %v404_v47 = vpack.c.bf16 %v389_v45, %v388_v44  ;;  %v753_v48 = vpop.f32.mrb[4].mxu0 }
  0xf8   : > { %v350_v49 = vadd.f32 %v753_v48, %v695_v33  ;;  %v341_v50 = vpop.f32.mrb[5].mxu0 }
  0xf9   : > { %v342_v51 = vadd.f32 %v695_v33, %v341_v50  ;;  %v754_v52 = vpop.f32.mrb[6].mxu0  ;;  %779 = vmatprep.mubr.bf16.mxu0 %v404_v47 }
  0xfa   : > { %v353_v53 = vadd.f32 %v754_v52, %v695_v33  ;;  %v344_v54 = vpop.f32.mrb[7].mxu0  ;;  %780 = vmatmul.mubr.bf16.vlgmr.msra.gmra.mrb[16].mxu0 %v405_v46  ;;  %v394_v56 = vmax.f32 %v350_v49, 0.0 }
  0xfb   : > { %v345_v55 = vadd.f32 %v695_v33, %v344_v54  ;;  %v392_v58 = vmax.f32 %v342_v51, 0.0 }
  0xfc   : > { %v395_v57 = vmax.f32 %v353_v53, 0.0 }
  0xfd   : > { %v393_v59 = vmax.f32 %v345_v55, 0.0 }
  0xfe   : > { %v407_v60 = vpack.c.bf16 %v395_v57, %v394_v56 }
  0xff   : > { %v757_v61 = vpop.f32.mrb[8].mxu0  ;;  %v406_v62 = vpack.c.bf16 %v393_v59, %v392_v58 }
 0x100   : > { %v366_v63 = vadd.f32 %v757_v61, %v695_v33  ;;  %v357_v0 = vpop.f32.mrb[9].mxu0 }
 0x101   : > { %v358_v1 = vadd.f32 %v695_v33, %v357_v0  ;;  %v758_v2 = vpop.f32.mrb[10].mxu0  ;;  %783 = vmatprep.mubr.bf16.mxu1 %v406_v62 }
 0x102   : > { %v369_v3 = vadd.f32 %v758_v2, %v695_v33  ;;  %v360_v4 = vpop.f32.mrb[11].mxu0  ;;  %784 = vmatmul.mubr.bf16.vlgmr.msra.gmra.mrb[0].mxu1 %v407_v60  ;;  %v398_v6 = vmax.f32 %v366_v63, 0.0 }
 0x103   : > { %v361_v5 = vadd.f32 %v695_v33, %v360_v4  ;;  %v396_v8 = vmax.f32 %v358_v1, 0.0 }
 0x104   : > { %v399_v7 = vmax.f32 %v369_v3, 0.0 }
 0x105   : > { %v397_v9 = vmax.f32 %v361_v5, 0.0 }
 0x106   : > { %v409_v10 = vpack.c.bf16 %v399_v7, %v398_v6 }
 0x107   : > { %v408_v11 = vpack.c.bf16 %v397_v9, %v396_v8  ;;  %v761_v12 = vpop.f32.mrb[12].mxu0 }
 0x108   : > { %v382_v13 = vadd.f32 %v761_v12, %v695_v33  ;;  %v373_v14 = vpop.f32.mrb[13].mxu0 }
 0x109   : > { %v374_v15 = vadd.f32 %v695_v33, %v373_v14  ;;  %v762_v16 = vpop.f32.mrb[14].mxu0  ;;  %787 = vmatprep.mubr.bf16.mxu1 %v408_v11 }
 0x10a   : > { %v385_v17 = vadd.f32 %v762_v16, %v695_v33  ;;  %v376_v18 = vpop.f32.mrb[15].mxu0  ;;  %788 = vmatmul.mubr.bf16.gmra.mrb[4].mxu1 %v409_v10  ;;  %v402_v20 = vmax.f32 %v382_v13, 0.0 }
 0x10b   : > { %v377_v19 = vadd.f32 %v695_v33, %v376_v18  ;;  %v400_v22 = vmax.f32 %v374_v15, 0.0 }
 0x10c   : > { %v403_v21 = vmax.f32 %v385_v17, 0.0 }
 0x10d   : > { %v401_v23 = vmax.f32 %v377_v19, 0.0 }
 0x10e   : > { %v411_v24 = vpack.c.bf16 %v403_v21, %v402_v20 }
 0x10f   : > { %v410_v25 = vpack.c.bf16 %v401_v23, %v400_v22 }
 0x111   : > { %791 = vmatprep.mubr.bf16.mxu1 %v410_v25 }
 0x112   : > { %792 = vmatmul.mubr.bf16.gmra.mrb[8].mxu1 %v411_v24 }
 0x1cd   : > { %v781_v27 = vpop.f32.mrb[16].mxu0 }
 0x1ce   : > { %v526_v28 = vadd.f32 %v781_v27, %v705_v26  ;;  %v517_v29 = vpop.f32.mrb[17].mxu0 }
 0x1cf   : > { %v518_v30 = vadd.f32 %v705_v26, %v517_v29  ;;  %v782_v31 = vpop.f32.mrb[18].mxu0 }
 0x1d0   : > { %v582_v32 = vmax.f32 %v526_v28, 0.0  ;;  %v529_v33 = vadd.f32 %v782_v31, %v705_v26  ;;  %v520_v34 = vpop.f32.mrb[19].mxu0 }
 0x1d1   : > { %v580_v35 = vmax.f32 %v518_v30, 0.0  ;;  %v521_v36 = vadd.f32 %v705_v26, %v520_v34 }
 0x1d2   : > { %598 = vst [vmem:[%s1072_s23 + $0x10] sm:$0xff] %v582_v32  ;;  %v583_v37 = vmax.f32 %v529_v33, 0.0 }
 0x1d3   : > { %596 = vst [vmem:[%s1072_s23] sm:$0xff] %v580_v35  ;;  %v581_v38 = vmax.f32 %v521_v36, 0.0 }
 0x1d4   : > { %599 = vst [vmem:[%s1072_s23 + $0x18] sm:$0xff] %v583_v37 }
 0x1d5   : > { %597 = vst [vmem:[%s1072_s23 + $0x8] sm:$0xff] %v581_v38  ;;  %v785_v39 = vpop.f32.mrb[0].mxu1 }
 0x1d6   : > { %v542_v40 = vadd.f32 %v785_v39, %v705_v26  ;;  %v533_v41 = vpop.f32.mrb[1].mxu1 }
 0x1d7   : > { %v534_v42 = vadd.f32 %v705_v26, %v533_v41  ;;  %v786_v43 = vpop.f32.mrb[2].mxu1 }
 0x1d8   : > { %v586_v44 = vmax.f32 %v542_v40, 0.0  ;;  %v545_v45 = vadd.f32 %v786_v43, %v705_v26  ;;  %v536_v46 = vpop.f32.mrb[3].mxu1 }
 0x1d9   : > { %v584_v47 = vmax.f32 %v534_v42, 0.0  ;;  %v537_v48 = vadd.f32 %v705_v26, %v536_v46 }
 0x1da   : > { %602 = vst [vmem:[%s1072_s23 + $0x30] sm:$0xff] %v586_v44  ;;  %v587_v49 = vmax.f32 %v545_v45, 0.0 }
 0x1db   : > { %600 = vst [vmem:[%s1072_s23 + $0x20] sm:$0xff] %v584_v47  ;;  %v585_v50 = vmax.f32 %v537_v48, 0.0 }
 0x1dc   : > { %603 = vst [vmem:[%s1072_s23 + $0x38] sm:$0xff] %v587_v49 }
 0x1dd   : > { %601 = vst [vmem:[%s1072_s23 + $0x28] sm:$0xff] %v585_v50  ;;  %v789_v51 = vpop.f32.mrb[4].mxu1 }
 0x1de   : > { %v558_v52 = vadd.f32 %v789_v51, %v705_v26  ;;  %v549_v53 = vpop.f32.mrb[5].mxu1 }
 0x1df   : > { %v550_v54 = vadd.f32 %v705_v26, %v549_v53  ;;  %v790_v55 = vpop.f32.mrb[6].mxu1 }
 0x1e0   : > { %v590_v56 = vmax.f32 %v558_v52, 0.0  ;;  %v561_v57 = vadd.f32 %v790_v55, %v705_v26  ;;  %v552_v58 = vpop.f32.mrb[7].mxu1 }
 0x1e1   : > { %v588_v59 = vmax.f32 %v550_v54, 0.0  ;;  %v553_v60 = vadd.f32 %v705_v26, %v552_v58 }
 0x1e2   : > { %606 = vst [vmem:[%s1072_s23 + $0x50] sm:$0xff] %v590_v56  ;;  %v591_v61 = vmax.f32 %v561_v57, 0.0 }
 0x1e3   : > { %604 = vst [vmem:[%s1072_s23 + $0x40] sm:$0xff] %v588_v59  ;;  %v589_v62 = vmax.f32 %v553_v60, 0.0 }
 0x1e4   : > { %607 = vst [vmem:[%s1072_s23 + $0x58] sm:$0xff] %v591_v61 }
 0x1e5   : > { %605 = vst [vmem:[%s1072_s23 + $0x48] sm:$0xff] %v589_v62  ;;  %v793_v63 = vpop.f32.mrb[8].mxu1 }
 0x1e6   : > { %v574_v0 = vadd.f32 %v793_v63, %v705_v26  ;;  %v565_v1 = vpop.f32.mrb[9].mxu1 }
 0x1e7   : > { %v566_v2 = vadd.f32 %v705_v26, %v565_v1  ;;  %v794_v3 = vpop.f32.mrb[10].mxu1 }
 0x1e8   : > { %v594_v4 = vmax.f32 %v574_v0, 0.0  ;;  %v577_v5 = vadd.f32 %v794_v3, %v705_v26  ;;  %v568_v6 = vpop.f32.mrb[11].mxu1 }
 0x1e9   : > { %v592_v7 = vmax.f32 %v566_v2, 0.0  ;;  %v569_v8 = vadd.f32 %v705_v26, %v568_v6 }
 0x1ea   : > { %610 = vst [vmem:[%s1072_s23 + $0x70] sm:$0xff] %v594_v4  ;;  %v595_v9 = vmax.f32 %v577_v5, 0.0 }
 0x1eb   : > { %608 = vst [vmem:[%s1072_s23 + $0x60] sm:$0xff] %v592_v7  ;;  %v593_v10 = vmax.f32 %v569_v8, 0.0 }
 0x1ec   : > { %611 = vst [vmem:[%s1072_s23 + $0x78] sm:$0xff] %v595_v9 }
 0x1ed   : > { %609 = vst [vmem:[%s1072_s23 + $0x68] sm:$0xff] %v593_v10 }
 0x1ee   : > { %874 = shalt.err (!%p871_p3)
}
 0x1ef   : > { %s875_s12 = scalar_lea.hbm %s1092_s7, 2048  ;;  %s879_s15 = scalar_lea.hbm %s1147_s5, 4096 }
 0x1f0   : > { %p876_p4 = scmp.ne.s32.totalorder %s1092_s7, %s875_s12  ;;  %p880_p9 = scmp.lt.u32.totalorder %s1092_s7, %s1147_s5 }
 0x1f1   : > { %p881_p10 = scmp.lt.u32.totalorder %s879_s15, %s875_s12  ;;  %p883_p12 = scmp.lt.u32.totalorder %s875_s12, %s1092_s7 }
 0x1f2   : > { %p877_p7 = pnand %p876_p4, %p996_p5 }
 0x1f3   : > { %p882_p11 = por %p881_p10, %p880_p9 }
 0x1f4   : > { %p878_p8 = pneg %p877_p7 }
 0x1f5   : > { %p884_p13 = por %p883_p12, %p882_p11 }
 0x1f7   : > { %p885_p0 = pnand %p884_p13, %p878_p8 }
 0x1f9   : > { %888 = shalt.err (!%p885_p0)
}
 0x1fa   : > { %s926_s23 = smov 128   ;;  %s927_s25 = smov 8  }
 0x1fb   : > { %811 = dma.vmem_to_hbm [thread:$0]  (%p996_p5), %s1094_s26, 2048, %s1092_s7, %s1101_s22, %s926_s23, %s926_s23, %s927_s25  }
 0x1fc PF: > { %p817_p1 = scmp.ge.s32.totalorder %s923_s21, 2  ;;  %s641_s30 = sand.u32 1, %s911_s18  }
 0x1fd   : > { %s642_s6 = scalar_lea.sflag [#allocation3], %s641_s30 }
 0x1fe   : > { %p814_p2 = pnand %p817_p1, %p1000_p6 }
 0x200   : > { %906 = dma.done.wait (!%p814_p2), %s642_s6, 2048  }
 0x201   : > { %908 = vsyncadd (!%p814_p2), %s642_s6, 4294965248  ;;  %p15_p3 = scmp.ge.s32.totalorder %s983_s24, 4   ;;  %s1150_s18 = smov %s915_s19 }
 0x202   : > { %s1151_s19 = smov %s919_s20  ;;  %s1152_s20 = smov %s994_s27 }
 0x203   : > { %s1153_s21 = smov %s983_s24  ;;  %17 = sbr.rel (!%p15_p3) target bundleno = 3 (0x3), region = 75 }
 0x20a   :  { %647 = vsyncpa [#allocation3], 1 }
 0x20b   :  { %649 = vsyncpa [#allocation3 + $0x1], 1 }

</bundles_post_ra>
